<compile_context>
chip_gen: v6e
topology: v6e:2x2x1
jax: 0.10.0
libtpu: 0.0.40
codegen_flags: <defaults>
</compile_context>

<pallas_src>
import functools

import jax
import jax.numpy as jnp
from jax import lax
from jax.experimental import pallas as pl
from jax.experimental.pallas import tpu as pltpu


# ============================================================================
# Generic M/N-tiled matmul kernel (hoisted, weight-tied lm_head).
# ============================================================================
def _matmul_kernel(a_ref, b_ref, o_ref):
    o_ref[...] = jnp.dot(
        a_ref[...], b_ref[...], preferred_element_type=jnp.float32
    ).astype(o_ref.dtype)


def _pallas_matmul(a, b, out_dtype=jnp.float32, vmem_budget=24 * 1024 * 1024):
    """a: (M, K) @ b: (K, N) -> (M, N) with f32 accumulation; K whole per block."""
    m, k = a.shape
    k2, n = b.shape
    assert k == k2
    # Pad M/N to sublane/lane-dense multiples: keeps tiles lane-dense (no
    # masked partial stores) and avoids full-extent fallback tiles for awkward
    # vocab / token counts.
    m_pad, n_pad = (-m) % 8, (-n) % 128
    if m_pad:
        a = jnp.pad(a, ((0, m_pad), (0, 0)))
    if n_pad:
        b = jnp.pad(b, ((0, 0), (0, n_pad)))
    mm, nn = m + m_pad, n + n_pad
    a_bytes, b_bytes = a.dtype.itemsize, b.dtype.itemsize

    def tile_bytes(tm, tn):
        # double-buffered A/B input blocks + double-buffered f32 output block
        return 2 * (tm * k * a_bytes + k * tn * b_bytes + tm * tn * 4)

    # Budget-aware tile selection (keeps v7x's smaller VMEM happy).
    # TODO(synk): add a K grid axis + f32 VMEM accumulator for very large K.
    tn = next((c for c in (1024, 512, 256, 128)
               if nn % c == 0 and tile_bytes(8, c) <= vmem_budget), 128)
    tm = next((c for c in (512, 256, 128, 64, 32, 16, 8)
               if mm % c == 0 and tile_bytes(c, tn) <= vmem_budget), 8)
    vmem_limit = int(min(max(tile_bytes(tm, tn) * 2, 32 * 1024 * 1024),
                         64 * 1024 * 1024))

    out = pl.pallas_call(
        _matmul_kernel,
        out_shape=jax.ShapeDtypeStruct((mm, nn), out_dtype),
        grid_spec=pltpu.PrefetchScalarGridSpec(
            num_scalar_prefetch=0,
            grid=(mm // tm, nn // tn),
            in_specs=[
                pl.BlockSpec((tm, k), lambda i, j: (i, 0)),
                pl.BlockSpec((k, tn), lambda i, j: (0, j)),
            ],
            out_specs=pl.BlockSpec((tm, tn), lambda i, j: (i, j)),
        ),
        compiler_params=pltpu.CompilerParams(
            # Independent tiles -> megacore sharding on v7x.
            dimension_semantics=("parallel", "parallel"),
            vmem_limit_bytes=vmem_limit,
        ),
    )(a, b)
    if m_pad or n_pad:
        out = out[:m, :n]
    return out


# ============================================================================
# Recurrent kernel: only the sequentially-dependent part of the RNN stack.
# ============================================================================
def _rnn_recurrent_kernel(x_ref, wih_ref, whh_ref, bias_ref, y_ref,
                          h_ref, act_ref, pbm_ref, proj_ref,
                          *, n_layers, t_chunk, block_b):
    """One (batch-block, time-chunk) grid cell of the stacked tanh-RNN.

    Layer-outer / time-inner: per layer, the chunk's input projections
    (x @ W_ih^T + bias) are computed off the serial path as block_b matmuls
    of M = t_chunk rows each; the serial fori_loop then only carries
    h @ W_hh^T + tanh per time step.
    """
    # rnn.initial_state: zero hidden state at the start of each batch block's
    # time sweep (time is the innermost, 'arbitrary' grid axis).
    @pl.when(pl.program_id(1) == 0)
    def _():
        h_ref[...] = jnp.zeros_like(h_ref)

    for layer in range(n_layers):
        src = x_ref if layer == 0 else act_ref     # (t_chunk, block_b, dim)
        w_ih = wih_ref[layer]                      # (dim, dim), VMEM-resident
        bias = bias_ref[layer]                     # (1, dim) f32, hoisted out of the time loop

        # (1) Batched input projection for the whole chunk, OFF the serial
        #     path: one M = t_chunk matmul per batch row, written batch-major
        #     (leading-index stores only).
        for b in range(block_b):
            pbm_ref[b] = (
                jnp.dot(src[:, b, :], w_ih, preferred_element_type=jnp.float32)
                + bias)

        # (2) Relayout batch-major -> time-major so every serial step reads one
        #     contiguous (block_b, dim) slab with a plain leading index.
        for tc in range(t_chunk):
            proj_ref[tc] = pbm_ref[:, tc, :]

        # (3) Serial recurrence: only h @ W_hh^T + tanh remain per time step.
        #     fori_loop keeps vreg live ranges bounded for large t_chunk.
        w_hh = whh_ref[layer]                      # (dim, dim)

        def step(tc, h):
            pre = proj_ref[tc] + jnp.dot(h, w_hh,
                                         preferred_element_type=jnp.float32)
            # tanh / adds stay f32 (v5e VPU/EUP have no bf16); MXU operands bf16.
            h_new = jnp.tanh(pre).astype(act_ref.dtype)
            act_ref[tc] = h_new
            return h_new

        h_ref[layer] = lax.fori_loop(0, t_chunk, step, h_ref[layer])

    # Emit the top-layer activations batch-major: folds the (t, b) -> (b, t)
    # permutation into the output write (no XLA transpose HBM round trip).
    for b in range(block_b):
        y_ref[b] = act_ref[:, b, :].astype(y_ref.dtype)


def rnn_lm_forward(ids, params, *, compute_dtype=jnp.bfloat16,
                   t_chunk=None, batch_block=None):
    """ids: [b, t] int32 -> logits [b, t, vocab] float32 (teacher-forced path).

    TODO(synk): the sampled branch (teacher_force_mask == 0) uses
    torch.multinomial; only the default teacher-forced path is implemented.
    """
    wte = params["wte"]                  # (vocab, dim)
    w_ih = params["w_ih"]                # (L, dim, dim)  PyTorch (out, in)
    w_hh = params["w_hh"]                # (L, dim, dim)
    b_ih = params["b_ih"]                # (L, 1, dim)
    b_hh = params["b_hh"]                # (L, 1, dim)

    batch, seq_len = ids.shape
    vocab, dim = wte.shape
    n_layers = w_ih.shape[0]
    cdt = jax.dtypes.canonicalize_dtype(compute_dtype)

    # One-time layout plumbing: pre-transposed weights (plain (1,0) contraction
    # with lane-dense outputs in every kernel matmul), MXU-native operand dtype
    # (bf16 by default, f32 accumulation), pre-summed f32 bias.
    wih_t = jnp.transpose(w_ih, (0, 2, 1)).astype(cdt)   # (L, dim_in, dim_out)
    whh_t = jnp.transpose(w_hh, (0, 2, 1)).astype(cdt)
    wte_c = wte.astype(cdt)
    bias = (b_ih + b_hh).astype(jnp.float32)             # (L, 1, dim)

    # Embedding gather, time-major (t, b, dim): each step's slab is contiguous.
    # TODO(synk): fuse into the kernel via scalar-prefetched ids + row gather.
    xs_tm = jnp.take(wte_c, ids.T, axis=0)

    # Batch-block grid axis ('parallel'): lets v7x's 2nd TensorCore work on the
    # serial recurrence.  Blocks must be sublane-dense (x8) or the full batch.
    if batch_block is None:
        batch_block = batch
        if batch % 2 == 0 and (batch // 2) % 8 == 0:
            batch_block = batch // 2
    assert batch % batch_block == 0
    assert batch_block == batch or batch_block % 8 == 0

    # Time chunk: amortizes grid overhead and feeds the off-critical-path input
    # projections with M = t_chunk rows; bounded by chunk-scratch VMEM.
    if t_chunk is None:
        per_elem = 2 * 4 + cdt.itemsize   # two f32 proj buffers + one act buffer
        t_chunk = seq_len
        for cand in (256, 128, 64, 32, 16, 8):
            if seq_len % cand == 0 and cand * batch_block * dim * per_elem <= (8 << 20):
                t_chunk = cand
                break
    assert seq_len % t_chunk == 0
    grid = (batch // batch_block, seq_len // t_chunk)

    wbytes = cdt.itemsize
    resident = (
        2 * (2 * n_layers * dim * dim * wbytes)        # W_ih^T + W_hh^T (2 buffers)
        + 2 * (n_layers * dim * 4)                     # bias
        + 2 * (t_chunk * batch_block * dim * wbytes)   # x chunk in
        + 2 * (batch_block * t_chunk * dim * wbytes)   # y chunk out
        + n_layers * batch_block * dim * wbytes        # h carry scratch
        + t_chunk * batch_block * dim * wbytes         # activation scratch
        + 2 * (t_chunk * batch_block * dim * 4)        # projection scratches (f32)
    )
    vmem_limit = int(min(max(resident * 3 // 2, 32 * 1024 * 1024),
                         64 * 1024 * 1024))

    kernel = functools.partial(
        _rnn_recurrent_kernel,
        n_layers=n_layers, t_chunk=t_chunk, block_b=batch_block)

    # NOTE: weight/bias index_maps are grid-invariant -> kept VMEM-resident.
    # TODO(synk): pipeline_mode=pl.Buffered(1) on those three specs would halve
    # their residency (matters at production dim on v7x's 64 MiB VMEM).
    y = pl.pallas_call(
        kernel,
        out_shape=jax.ShapeDtypeStruct((batch, seq_len, dim), cdt),
        grid_spec=pltpu.PrefetchScalarGridSpec(
            num_scalar_prefetch=0,
            grid=grid,
            in_specs=[
                pl.BlockSpec((t_chunk, batch_block, dim),
                             lambda bi, ti: (ti, bi, 0)),                      # xs (t-major)
                pl.BlockSpec((n_layers, dim, dim), lambda bi, ti: (0, 0, 0)),  # W_ih^T
                pl.BlockSpec((n_layers, dim, dim), lambda bi, ti: (0, 0, 0)),  # W_hh^T
                pl.BlockSpec((n_layers, 1, dim), lambda bi, ti: (0, 0, 0)),    # bias
            ],
            out_specs=pl.BlockSpec((batch_block, t_chunk, dim),
                                   lambda bi, ti: (bi, ti, 0)),                # y (b-major)
            scratch_shapes=[
                pltpu.VMEM((n_layers, batch_block, dim), cdt),          # h carry
                pltpu.VMEM((t_chunk, batch_block, dim), cdt),           # activations
                pltpu.VMEM((batch_block, t_chunk, dim), jnp.float32),   # proj (b-major)
                pltpu.VMEM((t_chunk, batch_block, dim), jnp.float32),   # proj (t-major)
            ],
        ),
        compiler_params=pltpu.CompilerParams(
            dimension_semantics=("parallel", "arbitrary"),   # time is sequential
            vmem_limit_bytes=vmem_limit,
        ),
    )(xs_tm, wih_t, whh_t, bias)

    # Hoisted lm_head (weight tied to wte): y is already batch-major, so the
    # flatten to (b*t, dim) is a free reshape -> one big M/N-tiled matmul.
    logits = _pallas_matmul(y.reshape(batch * seq_len, dim), wte_c.T)
    return logits.reshape(batch, seq_len, vocab)


# ============================================================================
# Pure-JAX reference of the same teacher-forced forward pass (f32).
# ============================================================================
def _reference_forward(ids, params):
    wte = params["wte"]
    w_ih, w_hh = params["w_ih"], params["w_hh"]
    b_ih, b_hh = params["b_ih"], params["b_hh"]
    batch, seq_len = ids.shape
    n_layers, dim, _ = w_ih.shape
    xs = jnp.take(wte, ids, axis=0)                  # (b, t, dim)
    h = jnp.zeros((n_layers, batch, dim), jnp.float32)
    logits_seq = []
    for t in range(seq_len):
        x = xs[:, t, :]
        new_h = []
        for layer in range(n_layers):
            pre = (x @ w_ih[layer].T + h[layer] @ w_hh[layer].T
                   + b_ih[layer] + b_hh[layer])
            x = jnp.tanh(pre)
            new_h.append(x)
        h = jnp.stack(new_h, axis=0)
        logits_seq.append(x @ wte.T)
    return jnp.stack(logits_seq, axis=1)             # (b, t, vocab)


def make_params(key, n_layers, dim, vocab):
    """Deterministic synthetic parameters (std = sqrt(1/dim), as in init_weights_)."""
    std = (1.0 / dim) ** 0.5
    k = jax.random.split(key, 5)
    return {
        "wte":  jax.random.normal(k[0], (vocab, dim), jnp.float32) * std,
        "w_ih": jax.random.normal(k[1], (n_layers, dim, dim), jnp.float32) * std,
        "w_hh": jax.random.normal(k[2], (n_layers, dim, dim), jnp.float32) * std,
        # Non-zero biases to exercise the bias path in the kernel.
        "b_ih": jax.random.normal(k[3], (n_layers, 1, dim), jnp.float32) * std,
        "b_hh": jax.random.normal(k[4], (n_layers, 1, dim), jnp.float32) * std,
    }


if __name__ == "__main__":
    n_layers, dim, vocab = 2, 32, 128
    batch, seq_len = 2, 8

    key = jax.random.PRNGKey(0)
    pkey, ikey = jax.random.split(key)
    params = make_params(pkey, n_layers, dim, vocab)
    ids = jax.random.randint(ikey, (batch, seq_len), 0, vocab, dtype=jnp.int32)

    ref = _reference_forward(ids, params)

    # f32 path: tight structural correctness check.
    out_f32 = jax.block_until_ready(
        rnn_lm_forward(ids, params, compute_dtype=jnp.float32))
    assert out_f32.shape == (batch, seq_len, vocab), out_f32.shape
    assert jnp.allclose(out_f32, ref, atol=1e-3, rtol=1e-3), \
        float(jnp.max(jnp.abs(out_f32 - ref)))

    # bf16 path (default / production): MXU-native operands, f32 accumulation.
    out_bf16 = jax.block_until_ready(rnn_lm_forward(ids, params))
    assert out_bf16.shape == (batch, seq_len, vocab), out_bf16.shape
    assert jnp.allclose(out_bf16, ref, atol=5e-2, rtol=5e-2), \
        float(jnp.max(jnp.abs(out_bf16 - ref)))

    print("KERNEL_OK")
</pallas_src>

<mosaic_0001>
module attributes {stable_mosaic.version = 11 : i64} {
  func.func @_rnn_recurrent_kernel(%arg0: i32, %arg1: i32, %arg2: memref<8x2x32xf32, #tpu.memory_space<vmem>>, %arg3: memref<2x32x32xf32, #tpu.memory_space<vmem>>, %arg4: memref<2x32x32xf32, #tpu.memory_space<vmem>>, %arg5: memref<2x1x32xf32, #tpu.memory_space<vmem>>, %arg6: memref<2x8x32xf32, #tpu.memory_space<vmem>>, %arg7: memref<2x2x32xf32, #tpu.memory_space<vmem>>, %arg8: memref<8x2x32xf32, #tpu.memory_space<vmem>>, %arg9: memref<2x8x32xf32, #tpu.memory_space<vmem>>, %arg10: memref<8x2x32xf32, #tpu.memory_space<vmem>>) attributes {dimension_semantics = [#tpu.dimension_semantics<parallel>, #tpu.dimension_semantics<arbitrary>], iteration_bounds = array<i64: 1, 1>, scalar_prefetch = 0 : i64, scratch_operands = 4 : i64, tpu.core_type = #tpu.core_type<tc>, window_params = [{transform_indices = @transform_0, window_bounds = array<i64: 8, 2, 32>}, {pipeline_mode = #tpu.pipeline_mode<synchronous>, transform_indices = @transform_1, window_bounds = array<i64: 2, 32, 32>}, {pipeline_mode = #tpu.pipeline_mode<synchronous>, transform_indices = @transform_2, window_bounds = array<i64: 2, 32, 32>}, {pipeline_mode = #tpu.pipeline_mode<synchronous>, transform_indices = @transform_3, window_bounds = array<i64: 2, 1, 32>}, {transform_indices = @transform_4, window_bounds = array<i64: 2, 8, 32>}]} {
    %c0_i32 = arith.constant 0 : i32
    %0 = arith.cmpi eq, %arg1, %c0_i32 : i32
    %1 = arith.extui %0 : i1 to i32
    %c0_i32_0 = arith.constant 0 : i32
    %2 = arith.cmpi ne, %1, %c0_i32_0 : i32
    scf.if %2 {
      %cst_164 = arith.constant 0.000000e+00 : f32
      %151 = vector.broadcast %cst_164 : f32 to vector<2x2x32xf32>
      %c0_165 = arith.constant 0 : index
      %c0_166 = arith.constant 0 : index
      %c0_167 = arith.constant 0 : index
      %152 = vector.load %arg7[%c0_165, %c0_166, %c0_167] : memref<2x2x32xf32, #tpu.memory_space<vmem>>, vector<2x2x32xf32>
      tpu.vector_store %arg7[%c0_165, %c0_166, %c0_167], %151 {strides = array<i32>} : memref<2x2x32xf32, #tpu.memory_space<vmem>>, vector<2x2x32xf32>,
    } else {
    }
    %c0 = arith.constant 0 : index
    %c0_1 = arith.constant 0 : index
    %c0_2 = arith.constant 0 : index
    %3 = vector.load %arg3[%c0, %c0_1, %c0_2] : memref<2x32x32xf32, #tpu.memory_space<vmem>>, vector<1x32x32xf32>
    %4 = vector.shape_cast %3 : vector<1x32x32xf32> to vector<32x32xf32>
    %c0_3 = arith.constant 0 : index
    %c0_4 = arith.constant 0 : index
    %c0_5 = arith.constant 0 : index
    %5 = vector.load %arg5[%c0_3, %c0_4, %c0_5] : memref<2x1x32xf32, #tpu.memory_space<vmem>>, vector<1x1x32xf32>
    %6 = vector.shape_cast %5 : vector<1x1x32xf32> to vector<1x32xf32>
    %c0_6 = arith.constant 0 : index
    %c0_7 = arith.constant 0 : index
    %c0_8 = arith.constant 0 : index
    %7 = vector.load %arg2[%c0_6, %c0_7, %c0_8] : memref<8x2x32xf32, #tpu.memory_space<vmem>>, vector<8x1x32xf32>
    %8 = vector.shape_cast %7 : vector<8x1x32xf32> to vector<8x32xf32>
    %cst = arith.constant dense<0.000000e+00> : vector<8x32xf32>
    %9 = tpu.matmul %8, %4, %cst {dimension_numbers = #tpu.dot_dimension_numbers<[1], [0], [0], [1], [0, 0, 1, 1], [], []>} : vector<8x32xf32>, vector<32x32xf32>, vector<8x32xf32> -> vector<8x32xf32>
    %10 = vector.broadcast %6 : vector<1x32xf32> to vector<8x32xf32>
    %11 = arith.addf %9, %10 : vector<8x32xf32>
    %c0_9 = arith.constant 0 : index
    %c0_10 = arith.constant 0 : index
    %c0_11 = arith.constant 0 : index
    %12 = vector.load %arg9[%c0_9, %c0_10, %c0_11] : memref<2x8x32xf32, #tpu.memory_space<vmem>>, vector<1x8x32xf32>
    %13 = vector.shape_cast %12 : vector<1x8x32xf32> to vector<8x32xf32>
    %14 = vector.shape_cast %11 : vector<8x32xf32> to vector<1x8x32xf32>
    tpu.vector_store %arg9[%c0_9, %c0_10, %c0_11], %14 {strides = array<i32>} : memref<2x8x32xf32, #tpu.memory_space<vmem>>, vector<1x8x32xf32>,
    %c0_12 = arith.constant 0 : index
    %c1 = arith.constant 1 : index
    %c0_13 = arith.constant 0 : index
    %15 = vector.load %arg2[%c0_12, %c1, %c0_13] : memref<8x2x32xf32, #tpu.memory_space<vmem>>, vector<8x1x32xf32>
    %16 = vector.shape_cast %15 : vector<8x1x32xf32> to vector<8x32xf32>
    %cst_14 = arith.constant dense<0.000000e+00> : vector<8x32xf32>
    %17 = tpu.matmul %16, %4, %cst_14 {dimension_numbers = #tpu.dot_dimension_numbers<[1], [0], [0], [1], [0, 0, 1, 1], [], []>} : vector<8x32xf32>, vector<32x32xf32>, vector<8x32xf32> -> vector<8x32xf32>
    %18 = vector.broadcast %6 : vector<1x32xf32> to vector<8x32xf32>
    %19 = arith.addf %17, %18 : vector<8x32xf32>
    %c1_15 = arith.constant 1 : index
    %c0_16 = arith.constant 0 : index
    %c0_17 = arith.constant 0 : index
    %20 = vector.load %arg9[%c1_15, %c0_16, %c0_17] : memref<2x8x32xf32, #tpu.memory_space<vmem>>, vector<1x8x32xf32>
    %21 = vector.shape_cast %20 : vector<1x8x32xf32> to vector<8x32xf32>
    %22 = vector.shape_cast %19 : vector<8x32xf32> to vector<1x8x32xf32>
    tpu.vector_store %arg9[%c1_15, %c0_16, %c0_17], %22 {strides = array<i32>} : memref<2x8x32xf32, #tpu.memory_space<vmem>>, vector<1x8x32xf32>,
    %c0_18 = arith.constant 0 : index
    %c0_19 = arith.constant 0 : index
    %c0_20 = arith.constant 0 : index
    %23 = vector.load %arg9[%c0_18, %c0_19, %c0_20] : memref<2x8x32xf32, #tpu.memory_space<vmem>>, vector<2x1x32xf32>
    %24 = vector.shape_cast %23 : vector<2x1x32xf32> to vector<2x32xf32>
    %c0_21 = arith.constant 0 : index
    %c0_22 = arith.constant 0 : index
    %c0_23 = arith.constant 0 : index
    %25 = vector.load %arg10[%c0_21, %c0_22, %c0_23] : memref<8x2x32xf32, #tpu.memory_space<vmem>>, vector<1x2x32xf32>
    %26 = vector.shape_cast %25 : vector<1x2x32xf32> to vector<2x32xf32>
    %27 = vector.shape_cast %24 : vector<2x32xf32> to vector<1x2x32xf32>
    tpu.vector_store %arg10[%c0_21, %c0_22, %c0_23], %27 {strides = array<i32>} : memref<8x2x32xf32, #tpu.memory_space<vmem>>, vector<1x2x32xf32>,
    %c0_24 = arith.constant 0 : index
    %c1_25 = arith.constant 1 : index
    %c0_26 = arith.constant 0 : index
    %28 = vector.load %arg9[%c0_24, %c1_25, %c0_26] : memref<2x8x32xf32, #tpu.memory_space<vmem>>, vector<2x1x32xf32>
    %29 = vector.shape_cast %28 : vector<2x1x32xf32> to vector<2x32xf32>
    %c1_27 = arith.constant 1 : index
    %c0_28 = arith.constant 0 : index
    %c0_29 = arith.constant 0 : index
    %30 = vector.load %arg10[%c1_27, %c0_28, %c0_29] : memref<8x2x32xf32, #tpu.memory_space<vmem>>, vector<1x2x32xf32>
    %31 = vector.shape_cast %30 : vector<1x2x32xf32> to vector<2x32xf32>
    %32 = vector.shape_cast %29 : vector<2x32xf32> to vector<1x2x32xf32>
    tpu.vector_store %arg10[%c1_27, %c0_28, %c0_29], %32 {strides = array<i32>} : memref<8x2x32xf32, #tpu.memory_space<vmem>>, vector<1x2x32xf32>,
    %c0_30 = arith.constant 0 : index
    %c2 = arith.constant 2 : index
    %c0_31 = arith.constant 0 : index
    %33 = vector.load %arg9[%c0_30, %c2, %c0_31] : memref<2x8x32xf32, #tpu.memory_space<vmem>>, vector<2x1x32xf32>
    %34 = vector.shape_cast %33 : vector<2x1x32xf32> to vector<2x32xf32>
    %c2_32 = arith.constant 2 : index
    %c0_33 = arith.constant 0 : index
    %c0_34 = arith.constant 0 : index
    %35 = vector.load %arg10[%c2_32, %c0_33, %c0_34] : memref<8x2x32xf32, #tpu.memory_space<vmem>>, vector<1x2x32xf32>
    %36 = vector.shape_cast %35 : vector<1x2x32xf32> to vector<2x32xf32>
    %37 = vector.shape_cast %34 : vector<2x32xf32> to vector<1x2x32xf32>
    tpu.vector_store %arg10[%c2_32, %c0_33, %c0_34], %37 {strides = array<i32>} : memref<8x2x32xf32, #tpu.memory_space<vmem>>, vector<1x2x32xf32>,
    %c0_35 = arith.constant 0 : index
    %c3 = arith.constant 3 : index
    %c0_36 = arith.constant 0 : index
    %38 = vector.load %arg9[%c0_35, %c3, %c0_36] : memref<2x8x32xf32, #tpu.memory_space<vmem>>, vector<2x1x32xf32>
    %39 = vector.shape_cast %38 : vector<2x1x32xf32> to vector<2x32xf32>
    %c3_37 = arith.constant 3 : index
    %c0_38 = arith.constant 0 : index
    %c0_39 = arith.constant 0 : index
    %40 = vector.load %arg10[%c3_37, %c0_38, %c0_39] : memref<8x2x32xf32, #tpu.memory_space<vmem>>, vector<1x2x32xf32>
    %41 = vector.shape_cast %40 : vector<1x2x32xf32> to vector<2x32xf32>
    %42 = vector.shape_cast %39 : vector<2x32xf32> to vector<1x2x32xf32>
    tpu.vector_store %arg10[%c3_37, %c0_38, %c0_39], %42 {strides = array<i32>} : memref<8x2x32xf32, #tpu.memory_space<vmem>>, vector<1x2x32xf32>,
    %c0_40 = arith.constant 0 : index
    %c4 = arith.constant 4 : index
    %c0_41 = arith.constant 0 : index
    %43 = vector.load %arg9[%c0_40, %c4, %c0_41] : memref<2x8x32xf32, #tpu.memory_space<vmem>>, vector<2x1x32xf32>
    %44 = vector.shape_cast %43 : vector<2x1x32xf32> to vector<2x32xf32>
    %c4_42 = arith.constant 4 : index
    %c0_43 = arith.constant 0 : index
    %c0_44 = arith.constant 0 : index
    %45 = vector.load %arg10[%c4_42, %c0_43, %c0_44] : memref<8x2x32xf32, #tpu.memory_space<vmem>>, vector<1x2x32xf32>
    %46 = vector.shape_cast %45 : vector<1x2x32xf32> to vector<2x32xf32>
    %47 = vector.shape_cast %44 : vector<2x32xf32> to vector<1x2x32xf32>
    tpu.vector_store %arg10[%c4_42, %c0_43, %c0_44], %47 {strides = array<i32>} : memref<8x2x32xf32, #tpu.memory_space<vmem>>, vector<1x2x32xf32>,
    %c0_45 = arith.constant 0 : index
    %c5 = arith.constant 5 : index
    %c0_46 = arith.constant 0 : index
    %48 = vector.load %arg9[%c0_45, %c5, %c0_46] : memref<2x8x32xf32, #tpu.memory_space<vmem>>, vector<2x1x32xf32>
    %49 = vector.shape_cast %48 : vector<2x1x32xf32> to vector<2x32xf32>
    %c5_47 = arith.constant 5 : index
    %c0_48 = arith.constant 0 : index
    %c0_49 = arith.constant 0 : index
    %50 = vector.load %arg10[%c5_47, %c0_48, %c0_49] : memref<8x2x32xf32, #tpu.memory_space<vmem>>, vector<1x2x32xf32>
    %51 = vector.shape_cast %50 : vector<1x2x32xf32> to vector<2x32xf32>
    %52 = vector.shape_cast %49 : vector<2x32xf32> to vector<1x2x32xf32>
    tpu.vector_store %arg10[%c5_47, %c0_48, %c0_49], %52 {strides = array<i32>} : memref<8x2x32xf32, #tpu.memory_space<vmem>>, vector<1x2x32xf32>,
    %c0_50 = arith.constant 0 : index
    %c6 = arith.constant 6 : index
    %c0_51 = arith.constant 0 : index
    %53 = vector.load %arg9[%c0_50, %c6, %c0_51] : memref<2x8x32xf32, #tpu.memory_space<vmem>>, vector<2x1x32xf32>
    %54 = vector.shape_cast %53 : vector<2x1x32xf32> to vector<2x32xf32>
    %c6_52 = arith.constant 6 : index
    %c0_53 = arith.constant 0 : index
    %c0_54 = arith.constant 0 : index
    %55 = vector.load %arg10[%c6_52, %c0_53, %c0_54] : memref<8x2x32xf32, #tpu.memory_space<vmem>>, vector<1x2x32xf32>
    %56 = vector.shape_cast %55 : vector<1x2x32xf32> to vector<2x32xf32>
    %57 = vector.shape_cast %54 : vector<2x32xf32> to vector<1x2x32xf32>
    tpu.vector_store %arg10[%c6_52, %c0_53, %c0_54], %57 {strides = array<i32>} : memref<8x2x32xf32, #tpu.memory_space<vmem>>, vector<1x2x32xf32>,
    %c0_55 = arith.constant 0 : index
    %c7 = arith.constant 7 : index
    %c0_56 = arith.constant 0 : index
    %58 = vector.load %arg9[%c0_55, %c7, %c0_56] : memref<2x8x32xf32, #tpu.memory_space<vmem>>, vector<2x1x32xf32>
    %59 = vector.shape_cast %58 : vector<2x1x32xf32> to vector<2x32xf32>
    %c7_57 = arith.constant 7 : index
    %c0_58 = arith.constant 0 : index
    %c0_59 = arith.constant 0 : index
    %60 = vector.load %arg10[%c7_57, %c0_58, %c0_59] : memref<8x2x32xf32, #tpu.memory_space<vmem>>, vector<1x2x32xf32>
    %61 = vector.shape_cast %60 : vector<1x2x32xf32> to vector<2x32xf32>
    %62 = vector.shape_cast %59 : vector<2x32xf32> to vector<1x2x32xf32>
    tpu.vector_store %arg10[%c7_57, %c0_58, %c0_59], %62 {strides = array<i32>} : memref<8x2x32xf32, #tpu.memory_space<vmem>>, vector<1x2x32xf32>,
    %c0_60 = arith.constant 0 : index
    %c0_61 = arith.constant 0 : index
    %c0_62 = arith.constant 0 : index
    %63 = vector.load %arg4[%c0_60, %c0_61, %c0_62] : memref<2x32x32xf32, #tpu.memory_space<vmem>>, vector<1x32x32xf32>
    %64 = vector.shape_cast %63 : vector<1x32x32xf32> to vector<32x32xf32>
    %c0_63 = arith.constant 0 : index
    %c0_64 = arith.constant 0 : index
    %c0_65 = arith.constant 0 : index
    %65 = vector.load %arg7[%c0_63, %c0_64, %c0_65] : memref<2x2x32xf32, #tpu.memory_space<vmem>>, vector<1x2x32xf32>
    %66 = vector.shape_cast %65 : vector<1x2x32xf32> to vector<2x32xf32>
    %c0_i32_66 = arith.constant 0 : i32
    %c8_i32 = arith.constant 8 : i32
    %67 = arith.addi %c0_i32_66, %c8_i32 : i32
    %c1_i32 = arith.constant 1 : i32
    %68 = scf.for %arg11 = %c0_i32_66 to %67 step %c1_i32 iter_args(%arg12 = %66) -> (vector<2x32xf32>)  : i32 {
      %151 = arith.index_cast %arg11 : i32 to index
      %c0_164 = arith.constant 0 : index
      %c0_165 = arith.constant 0 : index
      %152 = vector.load %arg10[%151, %c0_164, %c0_165] : memref<8x2x32xf32, #tpu.memory_space<vmem>>, vector<1x2x32xf32>
      %153 = vector.shape_cast %152 : vector<1x2x32xf32> to vector<2x32xf32>
      %cst_166 = arith.constant dense<0.000000e+00> : vector<2x32xf32>
      %154 = tpu.matmul %arg12, %64, %cst_166 {dimension_numbers = #tpu.dot_dimension_numbers<[1], [0], [0], [1], [0, 0, 1, 1], [], []>} : vector<2x32xf32>, vector<32x32xf32>, vector<2x32xf32> -> vector<2x32xf32>
      %155 = arith.addf %153, %154 : vector<2x32xf32>
      %156 = math.tanh %155 : vector<2x32xf32>
      %157 = arith.index_cast %arg11 : i32 to index
      %c0_167 = arith.constant 0 : index
      %c0_168 = arith.constant 0 : index
      %158 = vector.load %arg8[%157, %c0_167, %c0_168] : memref<8x2x32xf32, #tpu.memory_space<vmem>>, vector<1x2x32xf32>
      %159 = vector.shape_cast %158 : vector<1x2x32xf32> to vector<2x32xf32>
      %160 = vector.shape_cast %156 : vector<2x32xf32> to vector<1x2x32xf32>
      tpu.vector_store %arg8[%157, %c0_167, %c0_168], %160 {strides = array<i32>} : memref<8x2x32xf32, #tpu.memory_space<vmem>>, vector<1x2x32xf32>,
      scf.yield %156 : vector<2x32xf32>
    }
    %c8_i32_67 = arith.constant 8 : i32
    %c0_68 = arith.constant 0 : index
    %c0_69 = arith.constant 0 : index
    %c0_70 = arith.constant 0 : index
    %69 = vector.load %arg7[%c0_68, %c0_69, %c0_70] : memref<2x2x32xf32, #tpu.memory_space<vmem>>, vector<1x2x32xf32>
    %70 = vector.shape_cast %69 : vector<1x2x32xf32> to vector<2x32xf32>
    %71 = vector.shape_cast %68 : vector<2x32xf32> to vector<1x2x32xf32>
    tpu.vector_store %arg7[%c0_68, %c0_69, %c0_70], %71 {strides = array<i32>} : memref<2x2x32xf32, #tpu.memory_space<vmem>>, vector<1x2x32xf32>,
    %c1_71 = arith.constant 1 : index
    %c0_72 = arith.constant 0 : index
    %c0_73 = arith.constant 0 : index
    %72 = vector.load %arg3[%c1_71, %c0_72, %c0_73] : memref<2x32x32xf32, #tpu.memory_space<vmem>>, vector<1x32x32xf32>
    %73 = vector.shape_cast %72 : vector<1x32x32xf32> to vector<32x32xf32>
    %c1_74 = arith.constant 1 : index
    %c0_75 = arith.constant 0 : index
    %c0_76 = arith.constant 0 : index
    %74 = vector.load %arg5[%c1_74, %c0_75, %c0_76] : memref<2x1x32xf32, #tpu.memory_space<vmem>>, vector<1x1x32xf32>
    %75 = vector.shape_cast %74 : vector<1x1x32xf32> to vector<1x32xf32>
    %c0_77 = arith.constant 0 : index
    %c0_78 = arith.constant 0 : index
    %c0_79 = arith.constant 0 : index
    %76 = vector.load %arg8[%c0_77, %c0_78, %c0_79] : memref<8x2x32xf32, #tpu.memory_space<vmem>>, vector<8x1x32xf32>
    %77 = vector.shape_cast %76 : vector<8x1x32xf32> to vector<8x32xf32>
    %cst_80 = arith.constant dense<0.000000e+00> : vector<8x32xf32>
    %78 = tpu.matmul %77, %73, %cst_80 {dimension_numbers = #tpu.dot_dimension_numbers<[1], [0], [0], [1], [0, 0, 1, 1], [], []>} : vector<8x32xf32>, vector<32x32xf32>, vector<8x32xf32> -> vector<8x32xf32>
    %79 = vector.broadcast %75 : vector<1x32xf32> to vector<8x32xf32>
    %80 = arith.addf %78, %79 : vector<8x32xf32>
    %c0_81 = arith.constant 0 : index
    %c0_82 = arith.constant 0 : index
    %c0_83 = arith.constant 0 : index
    %81 = vector.load %arg9[%c0_81, %c0_82, %c0_83] : memref<2x8x32xf32, #tpu.memory_space<vmem>>, vector<1x8x32xf32>
    %82 = vector.shape_cast %81 : vector<1x8x32xf32> to vector<8x32xf32>
    %83 = vector.shape_cast %80 : vector<8x32xf32> to vector<1x8x32xf32>
    tpu.vector_store %arg9[%c0_81, %c0_82, %c0_83], %83 {strides = array<i32>} : memref<2x8x32xf32, #tpu.memory_space<vmem>>, vector<1x8x32xf32>,
    %c0_84 = arith.constant 0 : index
    %c1_85 = arith.constant 1 : index
    %c0_86 = arith.constant 0 : index
    %84 = vector.load %arg8[%c0_84, %c1_85, %c0_86] : memref<8x2x32xf32, #tpu.memory_space<vmem>>, vector<8x1x32xf32>
    %85 = vector.shape_cast %84 : vector<8x1x32xf32> to vector<8x32xf32>
    %cst_87 = arith.constant dense<0.000000e+00> : vector<8x32xf32>
    %86 = tpu.matmul %85, %73, %cst_87 {dimension_numbers = #tpu.dot_dimension_numbers<[1], [0], [0], [1], [0, 0, 1, 1], [], []>} : vector<8x32xf32>, vector<32x32xf32>, vector<8x32xf32> -> vector<8x32xf32>
    %87 = vector.broadcast %75 : vector<1x32xf32> to vector<8x32xf32>
    %88 = arith.addf %86, %87 : vector<8x32xf32>
    %c1_88 = arith.constant 1 : index
    %c0_89 = arith.constant 0 : index
    %c0_90 = arith.constant 0 : index
    %89 = vector.load %arg9[%c1_88, %c0_89, %c0_90] : memref<2x8x32xf32, #tpu.memory_space<vmem>>, vector<1x8x32xf32>
    %90 = vector.shape_cast %89 : vector<1x8x32xf32> to vector<8x32xf32>
    %91 = vector.shape_cast %88 : vector<8x32xf32> to vector<1x8x32xf32>
    tpu.vector_store %arg9[%c1_88, %c0_89, %c0_90], %91 {strides = array<i32>} : memref<2x8x32xf32, #tpu.memory_space<vmem>>, vector<1x8x32xf32>,
    %c0_91 = arith.constant 0 : index
    %c0_92 = arith.constant 0 : index
    %c0_93 = arith.constant 0 : index
    %92 = vector.load %arg9[%c0_91, %c0_92, %c0_93] : memref<2x8x32xf32, #tpu.memory_space<vmem>>, vector<2x1x32xf32>
    %93 = vector.shape_cast %92 : vector<2x1x32xf32> to vector<2x32xf32>
    %c0_94 = arith.constant 0 : index
    %c0_95 = arith.constant 0 : index
    %c0_96 = arith.constant 0 : index
    %94 = vector.load %arg10[%c0_94, %c0_95, %c0_96] : memref<8x2x32xf32, #tpu.memory_space<vmem>>, vector<1x2x32xf32>
    %95 = vector.shape_cast %94 : vector<1x2x32xf32> to vector<2x32xf32>
    %96 = vector.shape_cast %93 : vector<2x32xf32> to vector<1x2x32xf32>
    tpu.vector_store %arg10[%c0_94, %c0_95, %c0_96], %96 {strides = array<i32>} : memref<8x2x32xf32, #tpu.memory_space<vmem>>, vector<1x2x32xf32>,
    %c0_97 = arith.constant 0 : index
    %c1_98 = arith.constant 1 : index
    %c0_99 = arith.constant 0 : index
    %97 = vector.load %arg9[%c0_97, %c1_98, %c0_99] : memref<2x8x32xf32, #tpu.memory_space<vmem>>, vector<2x1x32xf32>
    %98 = vector.shape_cast %97 : vector<2x1x32xf32> to vector<2x32xf32>
    %c1_100 = arith.constant 1 : index
    %c0_101 = arith.constant 0 : index
    %c0_102 = arith.constant 0 : index
    %99 = vector.load %arg10[%c1_100, %c0_101, %c0_102] : memref<8x2x32xf32, #tpu.memory_space<vmem>>, vector<1x2x32xf32>
    %100 = vector.shape_cast %99 : vector<1x2x32xf32> to vector<2x32xf32>
    %101 = vector.shape_cast %98 : vector<2x32xf32> to vector<1x2x32xf32>
    tpu.vector_store %arg10[%c1_100, %c0_101, %c0_102], %101 {strides = array<i32>} : memref<8x2x32xf32, #tpu.memory_space<vmem>>, vector<1x2x32xf32>,
    %c0_103 = arith.constant 0 : index
    %c2_104 = arith.constant 2 : index
    %c0_105 = arith.constant 0 : index
    %102 = vector.load %arg9[%c0_103, %c2_104, %c0_105] : memref<2x8x32xf32, #tpu.memory_space<vmem>>, vector<2x1x32xf32>
    %103 = vector.shape_cast %102 : vector<2x1x32xf32> to vector<2x32xf32>
    %c2_106 = arith.constant 2 : index
    %c0_107 = arith.constant 0 : index
    %c0_108 = arith.constant 0 : index
    %104 = vector.load %arg10[%c2_106, %c0_107, %c0_108] : memref<8x2x32xf32, #tpu.memory_space<vmem>>, vector<1x2x32xf32>
    %105 = vector.shape_cast %104 : vector<1x2x32xf32> to vector<2x32xf32>
    %106 = vector.shape_cast %103 : vector<2x32xf32> to vector<1x2x32xf32>
    tpu.vector_store %arg10[%c2_106, %c0_107, %c0_108], %106 {strides = array<i32>} : memref<8x2x32xf32, #tpu.memory_space<vmem>>, vector<1x2x32xf32>,
    %c0_109 = arith.constant 0 : index
    %c3_110 = arith.constant 3 : index
    %c0_111 = arith.constant 0 : index
    %107 = vector.load %arg9[%c0_109, %c3_110, %c0_111] : memref<2x8x32xf32, #tpu.memory_space<vmem>>, vector<2x1x32xf32>
    %108 = vector.shape_cast %107 : vector<2x1x32xf32> to vector<2x32xf32>
    %c3_112 = arith.constant 3 : index
    %c0_113 = arith.constant 0 : index
    %c0_114 = arith.constant 0 : index
    %109 = vector.load %arg10[%c3_112, %c0_113, %c0_114] : memref<8x2x32xf32, #tpu.memory_space<vmem>>, vector<1x2x32xf32>
    %110 = vector.shape_cast %109 : vector<1x2x32xf32> to vector<2x32xf32>
    %111 = vector.shape_cast %108 : vector<2x32xf32> to vector<1x2x32xf32>
    tpu.vector_store %arg10[%c3_112, %c0_113, %c0_114], %111 {strides = array<i32>} : memref<8x2x32xf32, #tpu.memory_space<vmem>>, vector<1x2x32xf32>,
    %c0_115 = arith.constant 0 : index
    %c4_116 = arith.constant 4 : index
    %c0_117 = arith.constant 0 : index
    %112 = vector.load %arg9[%c0_115, %c4_116, %c0_117] : memref<2x8x32xf32, #tpu.memory_space<vmem>>, vector<2x1x32xf32>
    %113 = vector.shape_cast %112 : vector<2x1x32xf32> to vector<2x32xf32>
    %c4_118 = arith.constant 4 : index
    %c0_119 = arith.constant 0 : index
    %c0_120 = arith.constant 0 : index
    %114 = vector.load %arg10[%c4_118, %c0_119, %c0_120] : memref<8x2x32xf32, #tpu.memory_space<vmem>>, vector<1x2x32xf32>
    %115 = vector.shape_cast %114 : vector<1x2x32xf32> to vector<2x32xf32>
    %116 = vector.shape_cast %113 : vector<2x32xf32> to vector<1x2x32xf32>
    tpu.vector_store %arg10[%c4_118, %c0_119, %c0_120], %116 {strides = array<i32>} : memref<8x2x32xf32, #tpu.memory_space<vmem>>, vector<1x2x32xf32>,
    %c0_121 = arith.constant 0 : index
    %c5_122 = arith.constant 5 : index
    %c0_123 = arith.constant 0 : index
    %117 = vector.load %arg9[%c0_121, %c5_122, %c0_123] : memref<2x8x32xf32, #tpu.memory_space<vmem>>, vector<2x1x32xf32>
    %118 = vector.shape_cast %117 : vector<2x1x32xf32> to vector<2x32xf32>
    %c5_124 = arith.constant 5 : index
    %c0_125 = arith.constant 0 : index
    %c0_126 = arith.constant 0 : index
    %119 = vector.load %arg10[%c5_124, %c0_125, %c0_126] : memref<8x2x32xf32, #tpu.memory_space<vmem>>, vector<1x2x32xf32>
    %120 = vector.shape_cast %119 : vector<1x2x32xf32> to vector<2x32xf32>
    %121 = vector.shape_cast %118 : vector<2x32xf32> to vector<1x2x32xf32>
    tpu.vector_store %arg10[%c5_124, %c0_125, %c0_126], %121 {strides = array<i32>} : memref<8x2x32xf32, #tpu.memory_space<vmem>>, vector<1x2x32xf32>,
    %c0_127 = arith.constant 0 : index
    %c6_128 = arith.constant 6 : index
    %c0_129 = arith.constant 0 : index
    %122 = vector.load %arg9[%c0_127, %c6_128, %c0_129] : memref<2x8x32xf32, #tpu.memory_space<vmem>>, vector<2x1x32xf32>
    %123 = vector.shape_cast %122 : vector<2x1x32xf32> to vector<2x32xf32>
    %c6_130 = arith.constant 6 : index
    %c0_131 = arith.constant 0 : index
    %c0_132 = arith.constant 0 : index
    %124 = vector.load %arg10[%c6_130, %c0_131, %c0_132] : memref<8x2x32xf32, #tpu.memory_space<vmem>>, vector<1x2x32xf32>
    %125 = vector.shape_cast %124 : vector<1x2x32xf32> to vector<2x32xf32>
    %126 = vector.shape_cast %123 : vector<2x32xf32> to vector<1x2x32xf32>
    tpu.vector_store %arg10[%c6_130, %c0_131, %c0_132], %126 {strides = array<i32>} : memref<8x2x32xf32, #tpu.memory_space<vmem>>, vector<1x2x32xf32>,
    %c0_133 = arith.constant 0 : index
    %c7_134 = arith.constant 7 : index
    %c0_135 = arith.constant 0 : index
    %127 = vector.load %arg9[%c0_133, %c7_134, %c0_135] : memref<2x8x32xf32, #tpu.memory_space<vmem>>, vector<2x1x32xf32>
    %128 = vector.shape_cast %127 : vector<2x1x32xf32> to vector<2x32xf32>
    %c7_136 = arith.constant 7 : index
    %c0_137 = arith.constant 0 : index
    %c0_138 = arith.constant 0 : index
    %129 = vector.load %arg10[%c7_136, %c0_137, %c0_138] : memref<8x2x32xf32, #tpu.memory_space<vmem>>, vector<1x2x32xf32>
    %130 = vector.shape_cast %129 : vector<1x2x32xf32> to vector<2x32xf32>
    %131 = vector.shape_cast %128 : vector<2x32xf32> to vector<1x2x32xf32>
    tpu.vector_store %arg10[%c7_136, %c0_137, %c0_138], %131 {strides = array<i32>} : memref<8x2x32xf32, #tpu.memory_space<vmem>>, vector<1x2x32xf32>,
    %c1_139 = arith.constant 1 : index
    %c0_140 = arith.constant 0 : index
    %c0_141 = arith.constant 0 : index
    %132 = vector.load %arg4[%c1_139, %c0_140, %c0_141] : memref<2x32x32xf32, #tpu.memory_space<vmem>>, vector<1x32x32xf32>
    %133 = vector.shape_cast %132 : vector<1x32x32xf32> to vector<32x32xf32>
    %c1_142 = arith.constant 1 : index
    %c0_143 = arith.constant 0 : index
    %c0_144 = arith.constant 0 : index
    %134 = vector.load %arg7[%c1_142, %c0_143, %c0_144] : memref<2x2x32xf32, #tpu.memory_space<vmem>>, vector<1x2x32xf32>
    %135 = vector.shape_cast %134 : vector<1x2x32xf32> to vector<2x32xf32>
    %c0_i32_145 = arith.constant 0 : i32
    %c8_i32_146 = arith.constant 8 : i32
    %136 = arith.addi %c0_i32_145, %c8_i32_146 : i32
    %c1_i32_147 = arith.constant 1 : i32
    %137 = scf.for %arg11 = %c0_i32_145 to %136 step %c1_i32_147 iter_args(%arg12 = %135) -> (vector<2x32xf32>)  : i32 {
      %151 = arith.index_cast %arg11 : i32 to index
      %c0_164 = arith.constant 0 : index
      %c0_165 = arith.constant 0 : index
      %152 = vector.load %arg10[%151, %c0_164, %c0_165] : memref<8x2x32xf32, #tpu.memory_space<vmem>>, vector<1x2x32xf32>
      %153 = vector.shape_cast %152 : vector<1x2x32xf32> to vector<2x32xf32>
      %cst_166 = arith.constant dense<0.000000e+00> : vector<2x32xf32>
      %154 = tpu.matmul %arg12, %133, %cst_166 {dimension_numbers = #tpu.dot_dimension_numbers<[1], [0], [0], [1], [0, 0, 1, 1], [], []>} : vector<2x32xf32>, vector<32x32xf32>, vector<2x32xf32> -> vector<2x32xf32>
      %155 = arith.addf %153, %154 : vector<2x32xf32>
      %156 = math.tanh %155 : vector<2x32xf32>
      %157 = arith.index_cast %arg11 : i32 to index
      %c0_167 = arith.constant 0 : index
      %c0_168 = arith.constant 0 : index
      %158 = vector.load %arg8[%157, %c0_167, %c0_168] : memref<8x2x32xf32, #tpu.memory_space<vmem>>, vector<1x2x32xf32>
      %159 = vector.shape_cast %158 : vector<1x2x32xf32> to vector<2x32xf32>
      %160 = vector.shape_cast %156 : vector<2x32xf32> to vector<1x2x32xf32>
      tpu.vector_store %arg8[%157, %c0_167, %c0_168], %160 {strides = array<i32>} : memref<8x2x32xf32, #tpu.memory_space<vmem>>, vector<1x2x32xf32>,
      scf.yield %156 : vector<2x32xf32>
    }
    %c8_i32_148 = arith.constant 8 : i32
    %c1_149 = arith.constant 1 : index
    %c0_150 = arith.constant 0 : index
    %c0_151 = arith.constant 0 : index
    %138 = vector.load %arg7[%c1_149, %c0_150, %c0_151] : memref<2x2x32xf32, #tpu.memory_space<vmem>>, vector<1x2x32xf32>
    %139 = vector.shape_cast %138 : vector<1x2x32xf32> to vector<2x32xf32>
    %140 = vector.shape_cast %137 : vector<2x32xf32> to vector<1x2x32xf32>
    tpu.vector_store %arg7[%c1_149, %c0_150, %c0_151], %140 {strides = array<i32>} : memref<2x2x32xf32, #tpu.memory_space<vmem>>, vector<1x2x32xf32>,
    %c0_152 = arith.constant 0 : index
    %c0_153 = arith.constant 0 : index
    %c0_154 = arith.constant 0 : index
    %141 = vector.load %arg8[%c0_152, %c0_153, %c0_154] : memref<8x2x32xf32, #tpu.memory_space<vmem>>, vector<8x1x32xf32>
    %142 = vector.shape_cast %141 : vector<8x1x32xf32> to vector<8x32xf32>
    %c0_155 = arith.constant 0 : index
    %c0_156 = arith.constant 0 : index
    %c0_157 = arith.constant 0 : index
    %143 = vector.load %arg6[%c0_155, %c0_156, %c0_157] : memref<2x8x32xf32, #tpu.memory_space<vmem>>, vector<1x8x32xf32>
    %144 = vector.shape_cast %143 : vector<1x8x32xf32> to vector<8x32xf32>
    %145 = vector.shape_cast %142 : vector<8x32xf32> to vector<1x8x32xf32>
    tpu.vector_store %arg6[%c0_155, %c0_156, %c0_157], %145 {strides = array<i32>} : memref<2x8x32xf32, #tpu.memory_space<vmem>>, vector<1x8x32xf32>,
    %c0_158 = arith.constant 0 : index
    %c1_159 = arith.constant 1 : index
    %c0_160 = arith.constant 0 : index
    %146 = vector.load %arg8[%c0_158, %c1_159, %c0_160] : memref<8x2x32xf32, #tpu.memory_space<vmem>>, vector<8x1x32xf32>
    %147 = vector.shape_cast %146 : vector<8x1x32xf32> to vector<8x32xf32>
    %c1_161 = arith.constant 1 : index
    %c0_162 = arith.constant 0 : index
    %c0_163 = arith.constant 0 : index
    %148 = vector.load %arg6[%c1_161, %c0_162, %c0_163] : memref<2x8x32xf32, #tpu.memory_space<vmem>>, vector<1x8x32xf32>
    %149 = vector.shape_cast %148 : vector<1x8x32xf32> to vector<8x32xf32>
    %150 = vector.shape_cast %147 : vector<8x32xf32> to vector<1x8x32xf32>
    tpu.vector_store %arg6[%c1_161, %c0_162, %c0_163], %150 {strides = array<i32>} : memref<2x8x32xf32, #tpu.memory_space<vmem>>, vector<1x8x32xf32>,
    return
  }
  func.func @transform_0(%arg0: i32, %arg1: i32) -> (i32, i32, i32) {
    %c0_i32 = arith.constant 0 : i32
    %c0_i32_0 = arith.constant 0 : i32
    return %arg1, %arg0, %c0_i32 : i32, i32, i32
  }
  func.func @transform_1(%arg0: i32, %arg1: i32) -> (i32, i32, i32) {
    %c0_i32 = arith.constant 0 : i32
    %c0_i32_0 = arith.constant 0 : i32
    %c0_i32_1 = arith.constant 0 : i32
    %c0_i32_2 = arith.constant 0 : i32
    return %c0_i32, %c0_i32_0, %c0_i32_1 : i32, i32, i32
  }
  func.func @transform_2(%arg0: i32, %arg1: i32) -> (i32, i32, i32) {
    %c0_i32 = arith.constant 0 : i32
    %c0_i32_0 = arith.constant 0 : i32
    %c0_i32_1 = arith.constant 0 : i32
    %c0_i32_2 = arith.constant 0 : i32
    return %c0_i32, %c0_i32_0, %c0_i32_1 : i32, i32, i32
  }
  func.func @transform_3(%arg0: i32, %arg1: i32) -> (i32, i32, i32) {
    %c0_i32 = arith.constant 0 : i32
    %c0_i32_0 = arith.constant 0 : i32
    %c0_i32_1 = arith.constant 0 : i32
    %c0_i32_2 = arith.constant 0 : i32
    return %c0_i32, %c0_i32_0, %c0_i32_1 : i32, i32, i32
  }
  func.func @transform_4(%arg0: i32, %arg1: i32) -> (i32, i32, i32) {
    %c0_i32 = arith.constant 0 : i32
    %c0_i32_0 = arith.constant 0 : i32
    return %arg0, %arg1, %c0_i32 : i32, i32, i32
  }
}

</mosaic_0001>

<bundles_post_ra>
// kernel: tpu_custom_call.1
= control target key start
LH: loop header
LB: loop body
LE: loop exit
PB: predicated region body
PF: predicated region fallthrough
CT: control target
= control target key end

     0   :  { %9 = vsyncpa [#allocation7], 0  ;;  %s1435_s0 = inlined_call_operand.hbm [shape: f32[8,2,32], index: 0, kind: input, shape index: {}]   ;;  %s1436_s1 = inlined_call_operand.hbm [shape: f32[2,32,32], index: 1, kind: input, shape index: {}]   ;;  %s1437_s2 = inlined_call_operand.hbm [shape: f32[2,32,32], index: 2, kind: input, shape index: {}]   ;;  %s1438_s3 = inlined_call_operand.vmem [shape: f32[2,1,32], index: 3, kind: input, shape index: {}]   ;;  %s1439_s4 = inlined_call_operand.hbm [shape: f32[2,8,32], index: 4, kind: output, shape index: {}]  }
   0x1   :  { %10 = vsyncpa [#allocation10], 0 }
   0x2   :  { %11 = vsyncpa [#allocation8], 0  ;;  %s1217_s15 = smov [#allocation9]  }
   0x3   :  { %s29_s16 = sshll.u32 %s1217_s15, 4  ;;  %s30_s16 = int_to_ptr.vmem [resolvable:$true] %s29_s16 }
   0x4   :  { %s1107_s17 = scalar_lea.vmem %s30_s16, 1024  ;;  %p1112_p1 = scmp.lt.s32.totalorder %s30_s16, %s30_s16 }
   0x5   :  { %p1108_p0 = scmp.ne.s32.totalorder %s30_s16, %s1107_s17  ;;  %p1113_p2 = scmp.lt.s32.totalorder %s1107_s17, %s1107_s17 }
   0x7   :  { %p1114_p3 = por %p1113_p2, %p1112_p1 }
   0x9   :  { %p1115_p4 = pnand %p1114_p3, %p1108_p0 }
   0xb   :  { %1118 = shalt.err (!%p1115_p4)
}
   0xc   :  { %s1218_s18 = smov 128   ;;  %s1219_s19 = smov 8  }
   0xd   :  { %35 = dma.hbm_to_vmem [thread:$0]  %s1436_s1, 1024, %s30_s16, [#allocation10], %s1218_s18, %s1218_s18, %s1219_s19  }
   0xe   :  { %s1220_s22 = smov [#allocation6]  }
   0xf   :  { %s17_s23 = sshll.u32 %s1220_s22, 4  ;;  %s18_s23 = int_to_ptr.vmem [resolvable:$true] %s17_s23 }
  0x10   :  { %s1127_s24 = scalar_lea.vmem %s18_s23, 256  ;;  %p1132_p6 = scmp.lt.s32.totalorder %s18_s23, %s18_s23 }
  0x11   :  { %p1128_p5 = scmp.ne.s32.totalorder %s18_s23, %s1127_s24  ;;  %p1133_p7 = scmp.lt.s32.totalorder %s1127_s24, %s1127_s24 }
  0x13   :  { %p1134_p8 = por %p1133_p7, %p1132_p6 }
  0x15   :  { %p1135_p9 = pnand %p1134_p8, %p1128_p5 }
  0x17   :  { %1138 = shalt.err (!%p1135_p9)
}
  0x18   :  { %s1221_s25 = smov 32   ;;  %s1222_s26 = smov 2  }
  0x19   :  { %23 = dma.hbm_to_vmem [thread:$0]  %s1435_s0, 256, %s18_s23, [#allocation7], %s1221_s25, %s1221_s25, %s1222_s26  }
  0x1a   :  { %s1223_s29 = smov [#allocation11]  }
  0x1b   :  { %s41_s30 = sshll.u32 %s1223_s29, 4  ;;  %s42_s30 = int_to_ptr.vmem [resolvable:$true] %s41_s30 }
  0x1c   :  { %s1147_s1 = scalar_lea.vmem %s42_s30, 1024  ;;  %p1152_p11 = scmp.lt.s32.totalorder %s42_s30, %s42_s30 }
  0x1d   :  { %p1148_p10 = scmp.ne.s32.totalorder %s42_s30, %s1147_s1  ;;  %p1153_p12 = scmp.lt.s32.totalorder %s1147_s1, %s1147_s1 }
  0x1f   :  { %p1154_p13 = por %p1153_p12, %p1152_p11 }
  0x21   :  { %p1155_p0 = pnand %p1154_p13, %p1148_p10 }
  0x23   :  { %1158 = shalt.err (!%p1155_p0)
}
  0x24   :  { %47 = dma.hbm_to_vmem [thread:$0]  %s1437_s2, 1024, %s42_s30, [#allocation10], %s1218_s18, %s1218_s18, %s1219_s19  }
  0x25   :  { %1195 = dma.done.wait [#allocation7], 256  }
  0x26   :  { %1196 = vsyncadd [#allocation7], 4294967040 }
  0x27   :  { %1197 = dma.done.wait [#allocation10], 2048  }
  0x28   :  { %1198 = vsyncadd [#allocation10], 4294965248  ;;  %v1224_v0 = vmov 0.0   ;;  %vm1225_vm0 = vmmov 0   ;;  %v1277_v1 = vld [vmem:[#allocation11] sm:$0xff]  ;;  %v1279_v2 = vld [vmem:[#allocation11 + $0x8] sm:$0xff] }
  0x29   :  { %983 = vmatprep.subr.mxu0 %v1224_v0  ;;  %994 = vmatprep.subr.mxu1 %v1224_v0  ;;  %v1281_v3 = vld [vmem:[#allocation11 + $0x10] sm:$0xff]  ;;  %v1283_v4 = vld [vmem:[#allocation11 + $0x18] sm:$0xff]  ;;  %vm94_vm1 = vcmask 1041409   ;;  %vm97_vm2 = vcmask 1042434   ;;  %vm100_vm3 = vcmask 1043459   ;;  %v67_v7 = vld [vmem:[#allocation9 + $0x8] sm:$0xff] }
  0x2a   :  { %991 = vmatprep.mubr.msk.f32.mxu0 %vm1225_vm0, %v1224_v0  ;;  %1002 = vmatprep.mubr.msk.f32.mxu1 %vm1225_vm0, %v1224_v0  ;;  %v69_v5 = vld [vmem:[#allocation9 + $0x18] sm:$0xff]  ;;  %v68_v6 = vld [vmem:[#allocation9 + $0x10] sm:$0xff]  ;;  %vm103_vm4 = vcmask 1044484   ;;  %vm106_vm5 = vcmask 1045509   ;;  %vm109_vm6 = vcmask 1046534   ;;  %v66_v15 = vld [vmem:[#allocation9] sm:$0xff] }
  0x2b   :  { %984 = vmatpush3.msra.mxu0 %v69_v5  ;;  %995 = vmatpush3.msra.mxu1 %v69_v5  ;;  %v71_v8 = vld [vmem:[#allocation6] sm:$0x1]  ;;  %v72_v9 = vld [vmem:[#allocation6 + $0x2] sm:$0x1]  ;;  %v73_v10 = vld [vmem:[#allocation6 + $0x4] sm:$0x1] }
  0x2c   :  { %985 = vmatprep.subr.mxu0 %v1224_v0  ;;  %996 = vmatprep.subr.mxu1 %v1224_v0  ;;  %v74_v11 = vld [vmem:[#allocation6 + $0x6] sm:$0x1]  ;;  %v75_v12 = vld [vmem:[#allocation6 + $0x8] sm:$0x1]  ;;  %v76_v13 = vld [vmem:[#allocation6 + $0xa] sm:$0x1] }
  0x2d   :  { %986 = vmatpush3.msra.mxu0 %v68_v6  ;;  %997 = vmatpush3.msra.mxu1 %v68_v6  ;;  %v77_v14 = vld [vmem:[#allocation6 + $0xc] sm:$0x1]  ;;  %v78_v16 = vld [vmem:[#allocation6 + $0xe] sm:$0x1]  ;;  %v93_v17 = vrot.slane %v72_v9, 7  ;;  %v96_v18 = vrot.slane %v73_v10, 6 }
  0x2e   :  { %987 = vmatprep.subr.mxu0 %v1224_v0  ;;  %998 = vmatprep.subr.mxu1 %v1224_v0  ;;  %v99_v19 = vrot.slane %v74_v11, 5  ;;  %v102_v20 = vrot.slane %v75_v12, 4  ;;  %v105_v21 = vrot.slane %v76_v13, 3  ;;  %v108_v22 = vrot.slane %v77_v14, 2  ;;  %v189_v25 = vld [vmem:[#allocation6 + $0x3] sm:$0x1] }
  0x2f   :  { %988 = vmatpush3.msra.mxu0 %v67_v7  ;;  %999 = vmatpush3.msra.mxu1 %v67_v7  ;;  %v111_v23 = vrot.slane %v78_v16, 1  ;;  %v95_v24 = vsel %vm94_vm1, %v93_v17, %v71_v8  ;;  %v190_v26 = vld [vmem:[#allocation6 + $0x5] sm:$0x1]  ;;  %v191_v27 = vld [vmem:[#allocation6 + $0x7] sm:$0x1]  ;;  %v204_v34 = vrot.slane %v189_v25, 7 }
  0x30   :  { %989 = vmatprep.subr.mxu0 %v1224_v0  ;;  %1000 = vmatprep.subr.mxu1 %v1224_v0  ;;  %v98_v28 = vsel %vm97_vm2, %v96_v18, %v95_v24  ;;  %v188_v29 = vld [vmem:[#allocation6 + $0x1] sm:$0x1]  ;;  %v192_v30 = vld [vmem:[#allocation6 + $0x9] sm:$0x1]  ;;  %v193_v31 = vld [vmem:[#allocation6 + $0xb] sm:$0x1] }
  0x31   :  { %990 = vmatpush3.msra.mxu0 %v66_v15  ;;  %1001 = vmatpush3.msra.mxu1 %v66_v15  ;;  %v101_v32 = vsel %vm100_vm3, %v99_v19, %v98_v28  ;;  %v194_v33 = vld [vmem:[#allocation6 + $0xd] sm:$0x1]  ;;  %v206_v35 = vrot.slane %v190_v26, 6  ;;  %v208_v36 = vrot.slane %v191_v27, 5  ;;  %vm112_vm7 = vcmask 1047559   ;;  %s1332_s7 = smov 0  }
  0x32   :  { %v104_v37 = vsel %vm103_vm4, %v102_v20, %v101_v32  ;;  %v195_v38 = vld [vmem:[#allocation6 + $0xf] sm:$0x1]  ;;  %v210_v39 = vrot.slane %v192_v30, 4  ;;  %vm114_vm8 = vcmask 261120   ;;  %v205_v41 = vsel %vm94_vm1, %v204_v34, %v188_v29  ;;  %v942_v54 = vld [vmem:[%s1438_s3] ss:$0 sm:$0xff] }
  0x33   :  { %v107_v40 = vsel %vm106_vm5, %v105_v21, %v104_v37  ;;  %v212_v42 = vrot.slane %v193_v31, 3  ;;  %v207_v44 = vsel %vm97_vm2, %v206_v35, %v205_v41  ;;  %v214_v45 = vrot.slane %v194_v33, 2 }
  0x34   :  { %v110_v43 = vsel %vm109_vm6, %v108_v22, %v107_v40  ;;  %v209_v47 = vsel %vm100_vm3, %v208_v36, %v207_v44  ;;  %v216_v48 = vrot.slane %v195_v38, 1  ;;  %vm63_vm9 = vcmask 254976  }
  0x35   :  { %v113_v46 = vsel %vm112_vm7, %v111_v23, %v110_v43  ;;  %v211_v49 = vsel %vm103_vm4, %v210_v39, %v209_v47  ;;  %64 = vst.msk [vmem:[#allocation2] sm:$0x3] %vm63_vm9, %v1224_v0  ;;  %65 = vst.msk [vmem:[#allocation2 + $0x2] sm:$0x3] %vm63_vm9, %v1224_v0 }
  0x36   :  { %992 = vmatmul.mubr.msk.f32.vlgmr.msra.gmra.mxu0 %vm114_vm8, %v113_v46  ;;  %v213_v50 = vsel %vm106_vm5, %v212_v42, %v211_v49 }
  0x37   :  { %v215_v51 = vsel %vm109_vm6, %v214_v45, %v213_v50 }
  0x38   :  { %v217_v52 = vsel %vm112_vm7, %v216_v48, %v215_v51 }
  0x39   :  { %1003 = vmatmul.mubr.msk.f32.vlgmr.msra.gmra.mxu1 %vm114_vm8, %v217_v52 }
  0x3c   :  { %v368_v53 = vld [vmem:[#allocation2] sm:$0x3]  }
  0x3d   :  { %v1201_v34 = vmov %v368_v53  }
  0xf6   :  { %v183_v55 = vpop.f32.mrf.mxu0 }
  0xf7   :  { %v184_v56 = vadd.f32 %v942_v54, %v183_v55 }
  0xf8   :  { %v993_v57 = vpop.f32.mrf.mxu0 }
  0xf9   :  { %187 = vst.msk [vmem:[#allocation4] sm:$0xff] %vm114_vm8, %v184_v56  ;;  %v286_v58 = vpop.f32.mrf.mxu1 }
  0xfa   :  { %v287_v59 = vadd.f32 %v942_v54, %v286_v58 }
  0xfb   :  { %v1004_v60 = vpop.f32.mrf.mxu1 }
  0xfc   :  { %291 = vst.msk [vmem:[#allocation4 + $0x8] sm:$0xff] %vm114_vm8, %v287_v59 }
 0x100   :  { %v292_v61 = vld [vmem:[#allocation4] sm:$0x1]  ;;  %v301_v62 = vld [vmem:[#allocation4 + $0x1] sm:$0x1]  ;;  %v310_v63 = vld [vmem:[#allocation4 + $0x2] sm:$0x1] }
 0x101   :  { %v319_v5 = vld [vmem:[#allocation4 + $0x3] sm:$0x1]  ;;  %v328_v6 = vld [vmem:[#allocation4 + $0x4] sm:$0x1]  ;;  %v337_v10 = vld [vmem:[#allocation4 + $0x5] sm:$0x1] }
 0x102   :  { %v346_v11 = vld [vmem:[#allocation4 + $0x6] sm:$0x1]  ;;  %v355_v12 = vld [vmem:[#allocation4 + $0x7] sm:$0x1] }
 0x103   :  { %v293_v7 = vld [vmem:[#allocation4 + $0x8] sm:$0x1]  ;;  %v302_v8 = vld [vmem:[#allocation4 + $0x9] sm:$0x1]  ;;  %v311_v9 = vld [vmem:[#allocation4 + $0xa] sm:$0x1] }
 0x104   :  { %v296_v13 = vrot.slane %v293_v7, 7  ;;  %v305_v14 = vrot.slane %v302_v8, 7  ;;  %v314_v15 = vrot.slane %v311_v9, 7  ;;  %v320_v16 = vld [vmem:[#allocation4 + $0xb] sm:$0x1] }
 0x105   :  { %v323_v17 = vrot.slane %v320_v16, 7  ;;  %v329_v18 = vld [vmem:[#allocation4 + $0xc] sm:$0x1]  ;;  %v338_v19 = vld [vmem:[#allocation4 + $0xd] sm:$0x1] }
 0x106   :  { %v297_v20 = vsel %vm94_vm1, %v296_v13, %v292_v61  ;;  %v306_v21 = vsel %vm94_vm1, %v305_v14, %v301_v62  ;;  %v315_v22 = vsel %vm94_vm1, %v314_v15, %v310_v63  ;;  %v332_v23 = vrot.slane %v329_v18, 7  ;;  %v347_v24 = vld [vmem:[#allocation4 + $0xe] sm:$0x1]  ;;  %v356_v25 = vld [vmem:[#allocation4 + $0xf] sm:$0x1] }
 0x107   :  { %300 = vst.msk [vmem:[#allocation5] sm:$0x3] %vm63_vm9, %v297_v20  ;;  %309 = vst.msk [vmem:[#allocation5 + $0x2] sm:$0x3] %vm63_vm9, %v306_v21  ;;  %v324_v26 = vsel %vm94_vm1, %v323_v17, %v319_v5  ;;  %v341_v27 = vrot.slane %v338_v19, 7  ;;  %v350_v28 = vrot.slane %v347_v24, 7 }
 0x108   :  { %318 = vst.msk [vmem:[#allocation5 + $0x4] sm:$0x3] %vm63_vm9, %v315_v22  ;;  %v359_v29 = vrot.slane %v356_v25, 7  ;;  %327 = vst.msk [vmem:[#allocation5 + $0x6] sm:$0x3] %vm63_vm9, %v324_v26  ;;  %v333_v30 = vsel %vm94_vm1, %v332_v23, %v328_v6 }
 0x109   :  { %336 = vst.msk [vmem:[#allocation5 + $0x8] sm:$0x3] %vm63_vm9, %v333_v30  ;;  %v342_v31 = vsel %vm94_vm1, %v341_v27, %v337_v10  ;;  %v351_v32 = vsel %vm94_vm1, %v350_v28, %v346_v11 }
 0x10a   :  { %v360_v33 = vsel %vm94_vm1, %v359_v29, %v355_v12  ;;  %345 = vst.msk [vmem:[#allocation5 + $0xa] sm:$0x3] %vm63_vm9, %v342_v31  ;;  %354 = vst.msk [vmem:[#allocation5 + $0xc] sm:$0x3] %vm63_vm9, %v351_v32 }
 0x10b   :  { %363 = vst.msk [vmem:[#allocation5 + $0xe] sm:$0x3] %vm63_vm9, %v360_v33 }
 0x10c LB: > { %v1226_v35 = vmov 0.0   ;;  %vm1227_vm10 = vmmov 0   ;;  %s945_s8 = sshll.u32 %s1207_s7, 1  ;;  %s374_s7 = sadd.s32 1, %s1207_s7   ;;  %s1207_s7 = sphi %s1332_s7, %s374_s7   ;;  %v1203_v34 = vphi %v1201_v34, %v1202_v34  }
 0x10d   : > { %1005 = vmatprep.subr.mxu0 %v1226_v35  ;;  %1013 = vmatprep.mubr.msk.f32.mxu0 %vm1227_vm10, %v1226_v35  ;;  %s377_s9 = scalar_lea.vmem [#allocation5], %s945_s8  ;;  %s454_s10 = scalar_lea.vmem [#allocation3], %s945_s8 }
 0x10e   : > { %1006 = vmatpush3.msra.mxu0 %v1283_v4  ;;  %p371_p1 = scmp.ge.s32.totalorder %s374_s7, 8  }
 0x10f   : > { %1007 = vmatprep.subr.mxu0 %v1226_v35  ;;  %1027 = vmatprep.subr.mxu1 (%p371_p1), %v1224_v0  ;;  %v461_v41 = vld [vmem:[#allocation9 + $0x38] sm:$0xff] (%p371_p1)  ;;  %v460_v42 = vld [vmem:[#allocation9 + $0x30] sm:$0xff] (%p371_p1)  ;;  %v459_v43 = vld [vmem:[#allocation9 + $0x28] sm:$0xff] (%p371_p1) }
 0x110   : > { %1008 = vmatpush3.msra.mxu0 %v1281_v3  ;;  %1028 = vmatpush3.msra.mxu1 (%p371_p1), %v461_v41  ;;  %v458_v4 = vld [vmem:[#allocation9 + $0x20] sm:$0xff] (%p371_p1)  ;;  %v1374_v26 = vld [vmem:[#allocation11 + $0x28] sm:$0xff] (%p371_p1)  ;;  %v1376_v27 = vld [vmem:[#allocation11 + $0x30] sm:$0xff] (%p371_p1) }
 0x111   : > { %1009 = vmatprep.subr.mxu0 %v1226_v35  ;;  %1029 = vmatprep.subr.mxu1 (%p371_p1), %v1224_v0  ;;  %v1372_v25 = vld [vmem:[#allocation11 + $0x20] sm:$0xff] (%p371_p1)  ;;  %v1378_v28 = vld [vmem:[#allocation11 + $0x38] sm:$0xff] (%p371_p1) }
 0x112   : > { %1010 = vmatpush3.msra.mxu0 %v1279_v2  ;;  %v378_v36 = vld [vmem:[%s377_s9] sm:$0x3]  ;;  %1030 = vmatpush3.msra.mxu1 (%p371_p1), %v460_v42  ;;  %v746_v29 = vld [vmem:[#allocation2 + $0x2] sm:$0x3] (%p371_p1)  }
 0x113   : > { %1011 = vmatprep.subr.mxu0 %v1226_v35  ;;  %1031 = vmatprep.subr.mxu1 (%p371_p1), %v1224_v0  ;;  %v948_v30 = vld [vmem:[%s1438_s3 + $0x1] ss:$0 sm:$0xff] (%p371_p1)  ;;  %s1401_s3 = smov (%p371_p1), 0  }
 0x114   : > { %1012 = vmatpush3.msra.mxu0 %v1277_v1  ;;  %1032 = vmatpush3.msra.mxu1 (%p371_p1), %v459_v43 }
 0x115   : > { %1014 = vmatmul.mubr.msk.f32.vlgmr.msra.gmra.mxu0 %vm114_vm8, %v1203_v34  ;;  %1016 = vmatprep.subr.mxu0 (%p371_p1), %v1224_v0 }
 0x116   :  { %1017 = vmatpush3.msra.mxu0 (%p371_p1), %v461_v41  ;;  %1033 = vmatprep.subr.mxu1 (%p371_p1), %v1224_v0 }
 0x117   :  { %1018 = vmatprep.subr.mxu0 (%p371_p1), %v1224_v0  ;;  %1024 = vmatprep.mubr.msk.f32.mxu0 (%p371_p1), %vm1225_vm0, %v1224_v0 }
 0x118   :  { %1019 = vmatpush3.msra.mxu0 (%p371_p1), %v460_v42  ;;  %1034 = vmatpush3.msra.mxu1 (%p371_p1), %v458_v4 }
 0x119   :  { %1020 = vmatprep.subr.mxu0 (%p371_p1), %v1224_v0  ;;  %1035 = vmatprep.mubr.msk.f32.mxu1 (%p371_p1), %vm1225_vm0, %v1224_v0 }
 0x11a   :  { %1021 = vmatpush3.msra.mxu0 (%p371_p1), %v459_v43 }
 0x11b   :  { %1022 = vmatprep.subr.mxu0 (%p371_p1), %v1224_v0 }
 0x11c   :  { %1023 = vmatpush3.msra.mxu0 (%p371_p1), %v458_v4 }
 0x1d5   : > { %v448_v37 = vpop.f32.mrf.mxu0 }
 0x1d6   : > { %v452_v38 = vadd.f32 %v448_v37, %v378_v36 }
 0x1d7   : > { %v1015_v39 = vpop.f32.mrf.mxu0 }
 0x1d8   : > { %1095 = vtanh.f32 %v452_v38 }
 0x1e2   :  { %373 = sbr.rel (!%p371_p1) target bundleno = 268 (0x10c), region = 83 }
 0x1e5   : > { %v1096_v40 = vpop.eup %1095  }
 0x1e6   : > { %455 = vst.msk [vmem:[%s454_s10] sm:$0x3] %vm63_vm9, %v1096_v40  ;;  %v1202_v34 = vmov %v1096_v40   ;;  %456 = vst.msk [vmem:[#allocation2] sm:$0x3] (%p371_p1), %vm63_vm9, %v1096_v40 }
 0x1ed   :  { %v465_v44 = vld [vmem:[#allocation3 + $0x2] sm:$0x1]  ;;  %v466_v45 = vld [vmem:[#allocation3 + $0x4] sm:$0x1]  ;;  %v467_v46 = vld [vmem:[#allocation3 + $0x6] sm:$0x1] }
 0x1ee   :  { %v468_v47 = vld [vmem:[#allocation3 + $0x8] sm:$0x1]  ;;  %v464_v1 = vld [vmem:[#allocation3] sm:$0x1]  ;;  %v469_v2 = vld [vmem:[#allocation3 + $0xa] sm:$0x1] }
 0x1ef   :  { %v470_v3 = vld [vmem:[#allocation3 + $0xc] sm:$0x1]  ;;  %v471_v48 = vld [vmem:[#allocation3 + $0xe] sm:$0x1]  ;;  %v486_v49 = vrot.slane %v465_v44, 7  ;;  %v488_v50 = vrot.slane %v466_v45, 6 }
 0x1f0   :  { %v490_v51 = vrot.slane %v467_v46, 5  ;;  %v492_v52 = vrot.slane %v468_v47, 4  ;;  %v494_v53 = vrot.slane %v469_v2, 3  ;;  %v574_v54 = vld [vmem:[#allocation3 + $0x3] sm:$0x1]  ;;  %v496_v60 = vrot.slane %v470_v3, 2 }
 0x1f1   :  { %v487_v55 = vsel %vm94_vm1, %v486_v49, %v464_v1  ;;  %v575_v56 = vld [vmem:[#allocation3 + $0x5] sm:$0x1]  ;;  %v576_v57 = vld [vmem:[#allocation3 + $0x7] sm:$0x1]  ;;  %v577_v58 = vld [vmem:[#allocation3 + $0x9] sm:$0x1] }
 0x1f2   :  { %v489_v59 = vsel %vm97_vm2, %v488_v50, %v487_v55  ;;  %v498_v61 = vrot.slane %v471_v48, 1  ;;  %v573_v62 = vld [vmem:[#allocation3 + $0x1] sm:$0x1]  ;;  %v578_v63 = vld [vmem:[#allocation3 + $0xb] sm:$0x1]  ;;  %v589_v7 = vrot.slane %v574_v54, 7 }
 0x1f3   :  { %v491_v5 = vsel %vm100_vm3, %v490_v51, %v489_v59  ;;  %v579_v6 = vld [vmem:[#allocation3 + $0xd] sm:$0x1]  ;;  %v591_v8 = vrot.slane %v575_v56, 6  ;;  %v593_v9 = vrot.slane %v576_v57, 5  ;;  %v580_v11 = vld [vmem:[#allocation3 + $0xf] sm:$0x1] }
 0x1f4   :  { %v493_v10 = vsel %vm103_vm4, %v492_v52, %v491_v5  ;;  %v595_v12 = vrot.slane %v577_v58, 4  ;;  %v590_v14 = vsel %vm94_vm1, %v589_v7, %v573_v62  ;;  %v597_v15 = vrot.slane %v578_v63, 3 }
 0x1f5   :  { %v495_v13 = vsel %vm106_vm5, %v494_v53, %v493_v10  ;;  %v592_v17 = vsel %vm97_vm2, %v591_v8, %v590_v14  ;;  %v599_v0 = vrot.slane %v579_v6, 2  ;;  %v601_v20 = vrot.slane %v580_v11, 1 }
 0x1f6   :  { %v497_v16 = vsel %vm109_vm6, %v496_v60, %v495_v13  ;;  %v594_v19 = vsel %vm100_vm3, %v593_v9, %v592_v17  ;;  %v1209_v6 = vmov %v746_v29  }
 0x1f7   :  { %v499_v18 = vsel %vm112_vm7, %v498_v61, %v497_v16  ;;  %v596_v21 = vsel %vm103_vm4, %v595_v12, %v594_v19 }
 0x1f8   :  { %1025 = vmatmul.mubr.msk.f32.vlgmr.msra.gmra.mxu0 %vm114_vm8, %v499_v18  ;;  %v598_v22 = vsel %vm106_vm5, %v597_v15, %v596_v21 }
 0x1f9   :  { %v600_v23 = vsel %vm109_vm6, %v599_v0, %v598_v22 }
 0x1fa   :  { %v602_v24 = vsel %vm112_vm7, %v601_v20, %v600_v23 }
 0x1fb   :  { %1036 = vmatmul.mubr.msk.f32.vlgmr.msra.gmra.mxu1 %vm114_vm8, %v602_v24 }
 0x2b8   :  { %v568_v31 = vpop.f32.mrf.mxu0 }
 0x2b9   :  { %v569_v32 = vadd.f32 %v948_v30, %v568_v31 }
 0x2ba   :  { %v1026_v33 = vpop.f32.mrf.mxu0 }
 0x2bb   :  { %572 = vst.msk [vmem:[#allocation4] sm:$0xff] %vm114_vm8, %v569_v32  ;;  %v671_v34 = vpop.f32.mrf.mxu1 }
 0x2bc   :  { %v672_v35 = vadd.f32 %v948_v30, %v671_v34 }
 0x2bd   :  { %v1037_v36 = vpop.f32.mrf.mxu1 }
 0x2be   :  { %675 = vst.msk [vmem:[#allocation4 + $0x8] sm:$0xff] %vm114_vm8, %v672_v35 }
 0x2c2   :  { %v676_v37 = vld [vmem:[#allocation4] sm:$0x1]  ;;  %v684_v38 = vld [vmem:[#allocation4 + $0x1] sm:$0x1]  ;;  %v692_v39 = vld [vmem:[#allocation4 + $0x2] sm:$0x1] }
 0x2c3   :  { %v700_v40 = vld [vmem:[#allocation4 + $0x3] sm:$0x1]  ;;  %v708_v41 = vld [vmem:[#allocation4 + $0x4] sm:$0x1]  ;;  %v716_v45 = vld [vmem:[#allocation4 + $0x5] sm:$0x1] }
 0x2c4   :  { %v724_v46 = vld [vmem:[#allocation4 + $0x6] sm:$0x1]  ;;  %v732_v47 = vld [vmem:[#allocation4 + $0x7] sm:$0x1] }
 0x2c5   :  { %v677_v42 = vld [vmem:[#allocation4 + $0x8] sm:$0x1]  ;;  %v685_v43 = vld [vmem:[#allocation4 + $0x9] sm:$0x1]  ;;  %v693_v44 = vld [vmem:[#allocation4 + $0xa] sm:$0x1] }
 0x2c6   :  { %v680_v1 = vrot.slane %v677_v42, 7  ;;  %v688_v2 = vrot.slane %v685_v43, 7  ;;  %v696_v3 = vrot.slane %v693_v44, 7  ;;  %v701_v4 = vld [vmem:[#allocation4 + $0xb] sm:$0x1] }
 0x2c7   :  { %v704_v48 = vrot.slane %v701_v4, 7  ;;  %v709_v49 = vld [vmem:[#allocation4 + $0xc] sm:$0x1]  ;;  %v717_v50 = vld [vmem:[#allocation4 + $0xd] sm:$0x1] }
 0x2c8   :  { %v681_v51 = vsel %vm94_vm1, %v680_v1, %v676_v37  ;;  %v689_v52 = vsel %vm94_vm1, %v688_v2, %v684_v38  ;;  %v697_v53 = vsel %vm94_vm1, %v696_v3, %v692_v39  ;;  %v712_v54 = vrot.slane %v709_v49, 7  ;;  %v725_v55 = vld [vmem:[#allocation4 + $0xe] sm:$0x1]  ;;  %v733_v56 = vld [vmem:[#allocation4 + $0xf] sm:$0x1] }
 0x2c9   :  { %683 = vst.msk [vmem:[#allocation5] sm:$0x3] %vm63_vm9, %v681_v51  ;;  %691 = vst.msk [vmem:[#allocation5 + $0x2] sm:$0x3] %vm63_vm9, %v689_v52  ;;  %v705_v57 = vsel %vm94_vm1, %v704_v48, %v700_v40  ;;  %v720_v58 = vrot.slane %v717_v50, 7  ;;  %v728_v59 = vrot.slane %v725_v55, 7 }
 0x2ca   :  { %699 = vst.msk [vmem:[#allocation5 + $0x4] sm:$0x3] %vm63_vm9, %v697_v53  ;;  %v736_v60 = vrot.slane %v733_v56, 7  ;;  %707 = vst.msk [vmem:[#allocation5 + $0x6] sm:$0x3] %vm63_vm9, %v705_v57  ;;  %v713_v61 = vsel %vm94_vm1, %v712_v54, %v708_v41 }
 0x2cb   :  { %715 = vst.msk [vmem:[#allocation5 + $0x8] sm:$0x3] %vm63_vm9, %v713_v61  ;;  %v721_v62 = vsel %vm94_vm1, %v720_v58, %v716_v45  ;;  %v729_v63 = vsel %vm94_vm1, %v728_v59, %v724_v46 }
 0x2cc   :  { %v737_v5 = vsel %vm94_vm1, %v736_v60, %v732_v47  ;;  %723 = vst.msk [vmem:[#allocation5 + $0xa] sm:$0x3] %vm63_vm9, %v721_v62  ;;  %731 = vst.msk [vmem:[#allocation5 + $0xc] sm:$0x3] %vm63_vm9, %v729_v63 }
 0x2cd   :  { %739 = vst.msk [vmem:[#allocation5 + $0xe] sm:$0x3] %vm63_vm9, %v737_v5 }
 0x2ce LB: > { %v1228_v7 = vmov 0.0   ;;  %vm1229_vm11 = vmmov 0   ;;  %s951_s13 = sshll.u32 %s1215_s3, 1  ;;  %s752_s3 = sadd.s32 1, %s1215_s3   ;;  %s1215_s3 = sphi %s1401_s3, %s752_s3   ;;  %v1211_v6 = vphi %v1209_v6, %v1210_v6  }
 0x2cf   : > { %1038 = vmatprep.subr.mxu0 %v1228_v7  ;;  %1046 = vmatprep.mubr.msk.f32.mxu0 %vm1229_vm11, %v1228_v7  ;;  %s755_s14 = scalar_lea.vmem [#allocation5], %s951_s13  ;;  %s832_s15 = scalar_lea.vmem [#allocation3], %s951_s13 }
 0x2d0   : > { %1039 = vmatpush3.msra.mxu0 %v1378_v28  ;;  %p749_p2 = scmp.ge.s32.totalorder %s752_s3, 8  }
 0x2d1   : > { %1040 = vmatprep.subr.mxu0 %v1228_v7  ;;  %s1230_s16 = smov (%p749_p2), [#allocation12]  }
 0x2d2   : > { %1041 = vmatpush3.msra.mxu0 %v1376_v27  ;;  %s905_s17 = sshll.u32 (%p749_p2), %s1230_s16, 4  ;;  %s906_s17 = int_to_ptr.vmem [resolvable:$true] %s905_s17 }
 0x2d3   : > { %1042 = vmatprep.subr.mxu0 %v1228_v7  ;;  %s1159_s20 = scalar_lea.vmem (%p749_p2), %s906_s17, 256  ;;  %p1164_p4 = scmp.lt.s32.totalorder (%p749_p2), %s906_s17, %s906_s17 }
 0x2d4   : > { %1043 = vmatpush3.msra.mxu0 %v1374_v26  ;;  %v756_v8 = vld [vmem:[%s755_s14] sm:$0x3]  ;;  %p1160_p3 = scmp.ne.s32.totalorder (%p749_p2), %s906_s17, %s1159_s20  ;;  %p1165_p5 = scmp.lt.s32.totalorder (%p749_p2), %s1159_s20, %s1159_s20 }
 0x2d5   : > { %1044 = vmatprep.subr.mxu0 %v1228_v7 }
 0x2d6   : > { %1045 = vmatpush3.msra.mxu0 %v1372_v25  ;;  %p1166_p6 = por (%p749_p2), %p1165_p5, %p1164_p4 }
 0x2d7   : > { %1047 = vmatmul.mubr.msk.f32.vlgmr.msra.gmra.mxu0 %vm114_vm8, %v1211_v6 }
 0x2d8   :  { %p1167_p7 = pnand (%p749_p2), %p1166_p6, %p1160_p3 }
 0x397   : > { %v826_v9 = vpop.f32.mrf.mxu0 }
 0x398   : > { %v830_v10 = vadd.f32 %v826_v9, %v756_v8 }
 0x399   : > { %v1048_v11 = vpop.f32.mrf.mxu0 }
 0x39a   : > { %1097 = vtanh.f32 %v830_v10 }
 0x3a4   :  { %751 = sbr.rel (!%p749_p2) target bundleno = 718 (0x2ce), region = 94 }
 0x3a7   : > { %v1098_v12 = vpop.eup %1097  }
 0x3a8   : > { %833 = vst.msk [vmem:[%s832_s15] sm:$0x3] %vm63_vm9, %v1098_v12  ;;  %v1210_v6 = vmov %v1098_v12   ;;  %834 = vst.msk [vmem:[#allocation2 + $0x2] sm:$0x3] (%p749_p2), %vm63_vm9, %v1098_v12 }
 0x3af   :  { %v835_v13 = vld [vmem:[#allocation3] sm:$0x1]  ;;  %v836_v14 = vld [vmem:[#allocation3 + $0x2] sm:$0x1]  ;;  %v837_v15 = vld [vmem:[#allocation3 + $0x4] sm:$0x1] }
 0x3b0   :  { %v838_v16 = vld [vmem:[#allocation3 + $0x6] sm:$0x1]  ;;  %v839_v17 = vld [vmem:[#allocation3 + $0x8] sm:$0x1]  ;;  %v840_v0 = vld [vmem:[#allocation3 + $0xa] sm:$0x1] }
 0x3b1   :  { %v841_v18 = vld [vmem:[#allocation3 + $0xc] sm:$0x1]  ;;  %v851_v19 = vrot.slane %v836_v14, 7  ;;  %v853_v20 = vrot.slane %v837_v15, 6  ;;  %v842_v21 = vld [vmem:[#allocation3 + $0xe] sm:$0x1] }
 0x3b2   :  { %v855_v22 = vrot.slane %v838_v16, 5  ;;  %v857_v23 = vrot.slane %v839_v17, 4  ;;  %v859_v24 = vrot.slane %v840_v0, 3  ;;  %v861_v29 = vrot.slane %v841_v18, 2  ;;  %v867_v31 = vld [vmem:[#allocation3 + $0x1] sm:$0x1] }
 0x3b3   :  { %v852_v30 = vsel %vm94_vm1, %v851_v19, %v835_v13  ;;  %v868_v32 = vld [vmem:[#allocation3 + $0x3] sm:$0x1]  ;;  %v869_v25 = vld [vmem:[#allocation3 + $0x5] sm:$0x1]  ;;  %v870_v27 = vld [vmem:[#allocation3 + $0x7] sm:$0x1] }
 0x3b4   :  { %v854_v26 = vsel %vm97_vm2, %v853_v20, %v852_v30  ;;  %v871_v28 = vld [vmem:[#allocation3 + $0x9] sm:$0x1]  ;;  %v872_v33 = vld [vmem:[#allocation3 + $0xb] sm:$0x1]  ;;  %v863_v35 = vrot.slane %v842_v21, 1  ;;  %v883_v37 = vrot.slane %v868_v32, 7 }
 0x3b5   :  { %v856_v34 = vsel %vm100_vm3, %v855_v22, %v854_v26  ;;  %v873_v36 = vld [vmem:[#allocation3 + $0xd] sm:$0x1]  ;;  %v885_v38 = vrot.slane %v869_v25, 6  ;;  %v874_v40 = vld [vmem:[#allocation3 + $0xf] sm:$0x1]  ;;  %v887_v41 = vrot.slane %v870_v27, 5 }
 0x3b6   :  { %v858_v39 = vsel %vm103_vm4, %v857_v23, %v856_v34  ;;  %v889_v42 = vrot.slane %v871_v28, 4  ;;  %v884_v44 = vsel %vm94_vm1, %v883_v37, %v867_v31  ;;  %v891_v45 = vrot.slane %v872_v33, 3 }
 0x3b7   :  { %v860_v43 = vsel %vm106_vm5, %v859_v24, %v858_v39  ;;  %v886_v47 = vsel %vm97_vm2, %v885_v38, %v884_v44  ;;  %v893_v1 = vrot.slane %v873_v36, 2  ;;  %v895_v4 = vrot.slane %v874_v40, 1 }
 0x3b8   :  { %v862_v46 = vsel %vm109_vm6, %v861_v29, %v860_v43  ;;  %v888_v3 = vsel %vm100_vm3, %v887_v41, %v886_v47 }
 0x3b9   :  { %v864_v2 = vsel %vm112_vm7, %v863_v35, %v862_v46  ;;  %v890_v48 = vsel %vm103_vm4, %v889_v42, %v888_v3 }
 0x3ba   :  { %866 = vst.msk [vmem:[#allocation12] sm:$0xff] %vm114_vm8, %v864_v2  ;;  %v892_v49 = vsel %vm106_vm5, %v891_v45, %v890_v48 }
 0x3bb   :  { %v894_v50 = vsel %vm109_vm6, %v893_v1, %v892_v49 }
 0x3bc   :  { %v896_v51 = vsel %vm112_vm7, %v895_v4, %v894_v50 }
 0x3bd   :  { %899 = vst.msk [vmem:[#allocation12 + $0x8] sm:$0xff] %vm114_vm8, %v896_v51 }
 0x3be   :  { %1170 = shalt.err (!%p1167_p7)
}
 0x3bf   :  { %911 = dma.vmem_to_hbm [thread:$0]  %s906_s17, 256, %s1439_s4, [#allocation8], %s1218_s18, %s1218_s18, %s1219_s19  }
 0x3c0   :  { %1199 = dma.done.wait [#allocation8], 256  }
 0x3c1   :  { %1200 = vsyncadd [#allocation8], 4294967040 }
 0x3c2   :  { %915 = vsyncpa [#allocation7], 1 }
 0x3c3   :  { %916 = vsyncpa [#allocation10], 1 }
 0x3c4   :  { %917 = vsyncpa [#allocation8], 1 }

</bundles_post_ra>
